<compile_context>
chip_gen: v7x
topology: tpu7x:2x2x1
jax: 0.10.0
libtpu: 0.0.40
codegen_flags: <defaults>
</compile_context>

<pallas_src>
import math
from functools import partial

import jax
import jax.numpy as jnp
from jax import lax
from jax.experimental import pallas as pl
from jax.experimental.pallas import tpu as pltpu


# Rows per grid step.  Multiple of 128 (lane dim of the lane-dense output
# slab).  ~7-8 MiB live VMEM at 4096, ~15 MiB at 8192 — fits every generation.
TILE_B = 4096


# --------------------------------------------------------------------------
# Kernel: multi-hot gather-matmul  ->  +pts*w_num+b  ->  ReLU  ->  (1,256)·h^T
# --------------------------------------------------------------------------
def _mlp_kernel(cat_ref, pts_ref,
                wstk_ref, wnum_ref, bfused_ref,
                w2_ref, b2_ref,
                out_ref, *, n_cat, k_pad):
    tile_b = cat_ref.shape[0]

    # Build the multi-hot LHS: one 1.0 per categorical feature at its global
    # (offset-shifted, precomputed in the wrapper) row id.  Offsets are
    # disjoint so logical_or == sum.
    cat = cat_ref[...]                                         # (tile_b, n_cat) int32
    lanes = lax.broadcasted_iota(jnp.int32, (tile_b, k_pad), 1)
    hot = None
    for i in range(n_cat):
        m = lanes == cat[:, i:i + 1]
        hot = m if hot is None else jnp.logical_or(hot, m)
    onehot = jnp.where(hot, 1.0, 0.0).astype(jnp.bfloat16)     # (tile_b, k_pad) bf16

    # Fused embedding-gather + embedding[0] + fc[0] (categorical part):
    # (tile_b, 128) bf16 @ (128, 256) bf16 -> f32.
    h = jnp.dot(onehot, wstk_ref[...], preferred_element_type=jnp.float32)
    # Numeric branch folded to an exact f32 broadcast multiply-add.
    h = h + pts_ref[...] * wnum_ref[...] + bfused_ref[...]
    # fc[2]: ReLU (f32, VPU), then bf16 for the MXU contraction.
    h = jnp.maximum(h, 0.0).astype(jnp.bfloat16)

    # fc[3]: Linear(256, 1) as a contraction on dim 1 of both operands
    # (transposed-RHS matmul, natively supported) producing a lane-dense
    # (1, tile_b) slab -> unmasked stores + contiguous writeback DMA.
    out = lax.dot_general(
        w2_ref[...], h,
        dimension_numbers=(((1,), (1,)), ((), ())),
        preferred_element_type=jnp.float32)
    out_ref[...] = out + b2_ref[...]


# --------------------------------------------------------------------------
# Wrapper: offset the ids (tiny XLA op) + tiled pallas_call.
# --------------------------------------------------------------------------
def embedding_model_forward(cat_idx, points, fused, tile_b=TILE_B):
    """cat_idx: (B, n_cat) int32 indices; points: (B,) float32."""
    B, n_cat = cat_idx.shape
    k_pad, H = fused["w_stacked"].shape                         # (128, 256)

    offsets = jnp.asarray(fused["offsets"], jnp.int32)          # per-feature row offsets
    cat_glb = cat_idx.astype(jnp.int32) + offsets[None, :]      # (B, n_cat) global row ids
    pts = points.reshape(-1, 1).astype(jnp.float32)             # (B, 1) f32

    # Clamp the tile for small batches; keep it a multiple of 128.
    tile_b = min(tile_b, max(128, pl.cdiv(B, 128) * 128))
    n_tiles = pl.cdiv(B, tile_b)
    b_pad = n_tiles * tile_b
    if b_pad != B:
        # Only the tiny id / points arrays are padded (24 B/row), never x_cat.
        cat_glb = jnp.pad(cat_glb, ((0, b_pad - B), (0, 0)))
        pts = jnp.pad(pts, ((0, b_pad - B), (0, 0)))

    cost = pl.CostEstimate(
        flops=2 * b_pad * H * (k_pad + 1),
        transcendentals=0,
        bytes_accessed=(cat_glb.size * 4 + pts.size * 4 + b_pad * 4
                        + k_pad * H * 2 + 3 * H * 4 + 4),
    )

    kernel = partial(_mlp_kernel, n_cat=n_cat, k_pad=k_pad)

    out = pl.pallas_call(
        kernel,
        out_shape=jax.ShapeDtypeStruct((1, b_pad), jnp.float32),
        grid=(n_tiles,),
        in_specs=[
            pl.BlockSpec((tile_b, n_cat), lambda i: (i, 0)),    # streamed category ids
            pl.BlockSpec((tile_b, 1), lambda i: (i, 0)),        # streamed points (f32)
            pl.BlockSpec((k_pad, H), lambda i: (0, 0)),         # resident folded tables (bf16)
            pl.BlockSpec((1, H), lambda i: (0, 0)),             # w_num (f32)
            pl.BlockSpec((1, H), lambda i: (0, 0)),             # fused bias (f32)
            pl.BlockSpec((1, H), lambda i: (0, 0)),             # w2 row (bf16)
            pl.BlockSpec((1, 1), lambda i: (0, 0)),             # b2
        ],
        out_specs=pl.BlockSpec((1, tile_b), lambda i: (0, i)),  # lane-dense output
        compiler_params=pltpu.CompilerParams(
            dimension_semantics=("parallel",),
            vmem_limit_bytes=32 * 1024 * 1024),
        cost_estimate=cost,
    )(cat_glb, pts,
      fused["w_stacked"], fused["w_num"], fused["b_fused"],
      fused["w2_row"], fused["b2"])

    return out[0, :B].reshape(B, 1)


# --------------------------------------------------------------------------
# Parameter construction (mimics PyTorch default inits) + constant folding.
# --------------------------------------------------------------------------
def _linear_params(key, fan_in, fan_out):
    kw, kb = jax.random.split(key)
    bound = 1.0 / math.sqrt(fan_in)
    # stored as (in, out) so y = x @ W + b
    w = jax.random.uniform(kw, (fan_in, fan_out), jnp.float32, -bound, bound)
    b = jax.random.uniform(kb, (1, fan_out), jnp.float32, -bound, bound)
    return w, b


def make_params(key, emb_size):
    keys = jax.random.split(key, len(emb_size) + 4)
    # nn.Embedding(inp + 2, emb): N(0, 1)
    emb_tables = [
        jax.random.normal(keys[i], (n + 2, e), jnp.float32)
        for i, (n, e) in enumerate(emb_size)
    ]
    n_emb = sum(e for _, e in emb_size)
    w_emb, b_emb = _linear_params(keys[-4], n_emb, 384)   # self.embedding[0]
    w_num, b_num = _linear_params(keys[-3], 1, 128)       # self.num[0]
    w1, b1 = _linear_params(keys[-2], 512, 256)           # fc[0]
    w2, b2 = _linear_params(keys[-1], 256, 1)             # fc[3]
    return {
        "emb_tables": emb_tables,
        "w_emb": w_emb, "b_emb": b_emb,
        "w_num": w_num, "b_num": b_num,
        "w1": w1, "b1": b1,
        "w2": w2, "b2": b2,
    }


def fuse_params(p, emb_size):
    """Fold the whole affine chain ahead of the ReLU (exact: no nonlinearity
    before fc[0]).

    torch.cat([num(pts), embedding(x_cat)]) puts the numeric 128 features
    first, so W1 rows [0:128] act on the numeric branch and rows [128:512] on
    the embedding branch.  Additionally each embedding table is folded through
    (W_emb @ W1_cat) and the resulting per-table (vocab_i+2, 256) blocks are
    stacked so an in-kernel multi-hot matmul performs gather+linear at once.
    """
    w1n = p["w1"][:128, :]                                   # (128, 256)
    w1c = p["w1"][128:, :]                                   # (384, 256)
    w_cat = p["w_emb"] @ w1c                                 # (n_emb, 256)

    blocks, offsets = [], []
    row = 0
    off = 0
    for tbl, (n, e) in zip(p["emb_tables"], emb_size):
        blocks.append(tbl @ w_cat[row:row + e, :])           # (n+2, 256)
        offsets.append(off)
        row += e
        off += n + 2
    w_stacked = jnp.concatenate(blocks, axis=0)              # (sum(n+2), 256)
    k_total = w_stacked.shape[0]
    k_pad = max(128, ((k_total + 127) // 128) * 128)
    w_stacked = jnp.pad(w_stacked, ((0, k_pad - k_total), (0, 0)))

    w_num = p["w_num"] @ w1n                                 # (1, 256)
    b_fused = p["b_emb"] @ w1c + p["b_num"] @ w1n + p["b1"]  # (1, 256)
    return {
        "w_stacked": w_stacked.astype(jnp.bfloat16),         # (k_pad, 256) bf16, VMEM-resident
        "offsets": tuple(offsets),
        "w_num": w_num.astype(jnp.float32),
        "b_fused": b_fused.astype(jnp.float32),
        "w2_row": p["w2"].T.astype(jnp.bfloat16),             # (1, 256) bf16
        "b2": p["b2"].reshape(1, 1).astype(jnp.float32),
    }


# --------------------------------------------------------------------------
# Pure-JAX reference (unfused, f32) for a sanity check.
# --------------------------------------------------------------------------
def reference_forward(cat_idx, points, p):
    embs = [jnp.take(tbl, cat_idx[:, i], axis=0)
            for i, tbl in enumerate(p["emb_tables"])]
    x_cat = jnp.concatenate(embs, axis=1)
    x_cat = x_cat @ p["w_emb"] + p["b_emb"]
    x_num = points.reshape(-1, 1) @ p["w_num"] + p["b_num"]
    x_all = jnp.concatenate([x_num, x_cat], axis=1)
    h = jnp.maximum(x_all @ p["w1"] + p["b1"], 0.0)
    return h @ p["w2"] + p["b2"]


if __name__ == "__main__":
    key = jax.random.PRNGKey(0)

    # small synthetic categorical cardinalities (5 features, like the wine set)
    vocab_sizes = [10, 8, 12, 6, 9]
    emb_size = [(n, int(min(math.ceil(n / 2), 24))) for n in vocab_sizes]
    # -> emb dims [5, 4, 6, 3, 5], n_emb = 23, sum(vocab+2) = 55

    k_params, k_idx, k_pts = jax.random.split(key, 3)
    params = make_params(k_params, emb_size)
    fused = fuse_params(params, emb_size)

    B = 8
    cat_cols = [
        jax.random.randint(jax.random.fold_in(k_idx, i), (B,), 0, n + 2)
        for i, (n, _) in enumerate(emb_size)
    ]
    cat_idx = jnp.stack(cat_cols, axis=1).astype(jnp.int32)      # (B, 5)
    points = jax.random.uniform(k_pts, (B,), jnp.float32, 80.0, 100.0)

    out = embedding_model_forward(cat_idx, points, fused)
    out = jax.block_until_ready(out)
    assert out.shape == (B, 1) and out.dtype == jnp.float32

    # sanity: folded bf16 kernel vs unfused f32 reference (loose tol for bf16).
    ref = reference_forward(cat_idx, points, params)
    assert jnp.allclose(out, ref, rtol=2e-2, atol=1e-1), (out, ref)

    print("KERNEL_OK")
</pallas_src>

<mosaic_0001>
module attributes {stable_mosaic.version = 11 : i64} {
  func.func @_mlp_kernel(%arg0: i32, %arg1: memref<128x5xi32, #tpu.memory_space<vmem>>, %arg2: memref<128x1xf32, #tpu.memory_space<vmem>>, %arg3: memref<128x256xbf16, #tpu.memory_space<vmem>>, %arg4: memref<1x256xf32, #tpu.memory_space<vmem>>, %arg5: memref<1x256xf32, #tpu.memory_space<vmem>>, %arg6: memref<1x256xbf16, #tpu.memory_space<vmem>>, %arg7: memref<1x1xf32, #tpu.memory_space<vmem>>, %arg8: memref<1x128xf32, #tpu.memory_space<vmem>>) attributes {dimension_semantics = [#tpu.dimension_semantics<parallel>], iteration_bounds = array<i64: 1>, scalar_prefetch = 0 : i64, scratch_operands = 0 : i64, tpu.core_type = #tpu.core_type<tc>, window_params = [{transform_indices = @transform_0, window_bounds = array<i64: 128, 5>}, {transform_indices = @transform_1, window_bounds = array<i64: 128, 1>}, {pipeline_mode = #tpu.pipeline_mode<synchronous>, transform_indices = @transform_2, window_bounds = array<i64: 128, 256>}, {pipeline_mode = #tpu.pipeline_mode<synchronous>, transform_indices = @transform_3, window_bounds = array<i64: 1, 256>}, {pipeline_mode = #tpu.pipeline_mode<synchronous>, transform_indices = @transform_4, window_bounds = array<i64: 1, 256>}, {pipeline_mode = #tpu.pipeline_mode<synchronous>, transform_indices = @transform_5, window_bounds = array<i64: 1, 256>}, {pipeline_mode = #tpu.pipeline_mode<synchronous>, transform_indices = @transform_6, window_bounds = array<i64: 1, 1>}, {transform_indices = @transform_7, window_bounds = array<i64: 1, 128>}]} {
    %c0 = arith.constant 0 : index
    %c0_0 = arith.constant 0 : index
    %0 = vector.load %arg1[%c0, %c0_0] : memref<128x5xi32, #tpu.memory_space<vmem>>, vector<128x5xi32>
    %1 = tpu.iota {dimensions = array<i32: 1>} : vector<128x128xi32>
    %2 = vector.extract_strided_slice %0 {offsets = [0, 0], sizes = [128, 1], strides = [1, 1]} : vector<128x5xi32> to vector<128x1xi32>
    %3 = vector.broadcast %2 : vector<128x1xi32> to vector<128x128xi32>
    %4 = arith.cmpi eq, %1, %3 : vector<128x128xi32>
    %5 = vector.extract_strided_slice %0 {offsets = [0, 1], sizes = [128, 1], strides = [1, 1]} : vector<128x5xi32> to vector<128x1xi32>
    %6 = vector.broadcast %5 : vector<128x1xi32> to vector<128x128xi32>
    %7 = arith.cmpi eq, %1, %6 : vector<128x128xi32>
    %8 = arith.ori %4, %7 : vector<128x128xi1>
    %9 = vector.extract_strided_slice %0 {offsets = [0, 2], sizes = [128, 1], strides = [1, 1]} : vector<128x5xi32> to vector<128x1xi32>
    %10 = vector.broadcast %9 : vector<128x1xi32> to vector<128x128xi32>
    %11 = arith.cmpi eq, %1, %10 : vector<128x128xi32>
    %12 = arith.ori %8, %11 : vector<128x128xi1>
    %13 = vector.extract_strided_slice %0 {offsets = [0, 3], sizes = [128, 1], strides = [1, 1]} : vector<128x5xi32> to vector<128x1xi32>
    %14 = vector.broadcast %13 : vector<128x1xi32> to vector<128x128xi32>
    %15 = arith.cmpi eq, %1, %14 : vector<128x128xi32>
    %16 = arith.ori %12, %15 : vector<128x128xi1>
    %17 = vector.extract_strided_slice %0 {offsets = [0, 4], sizes = [128, 1], strides = [1, 1]} : vector<128x5xi32> to vector<128x1xi32>
    %18 = vector.broadcast %17 : vector<128x1xi32> to vector<128x128xi32>
    %19 = arith.cmpi eq, %1, %18 : vector<128x128xi32>
    %20 = arith.ori %16, %19 : vector<128x128xi1>
    %cst = arith.constant 1.000000e+00 : f32
    %cst_1 = arith.constant 0.000000e+00 : f32
    %21 = vector.broadcast %cst : f32 to vector<128x128xf32>
    %22 = vector.broadcast %cst_1 : f32 to vector<128x128xf32>
    %23 = arith.select %20, %21, %22 : vector<128x128xi1>, vector<128x128xf32>
    %24 = arith.truncf %23 : vector<128x128xf32> to vector<128x128xbf16>
    %c0_2 = arith.constant 0 : index
    %c0_3 = arith.constant 0 : index
    %25 = vector.load %arg3[%c0_2, %c0_3] : memref<128x256xbf16, #tpu.memory_space<vmem>>, vector<128x256xbf16>
    %cst_4 = arith.constant dense<0.000000e+00> : vector<128x256xf32>
    %26 = tpu.matmul %24, %25, %cst_4 {dimension_numbers = #tpu.dot_dimension_numbers<[1], [0], [0], [1], [0, 0, 1, 1], [], []>} : vector<128x128xbf16>, vector<128x256xbf16>, vector<128x256xf32> -> vector<128x256xf32>
    %c0_5 = arith.constant 0 : index
    %c0_6 = arith.constant 0 : index
    %27 = vector.load %arg2[%c0_5, %c0_6] : memref<128x1xf32, #tpu.memory_space<vmem>>, vector<128x1xf32>
    %c0_7 = arith.constant 0 : index
    %c0_8 = arith.constant 0 : index
    %28 = vector.load %arg4[%c0_7, %c0_8] : memref<1x256xf32, #tpu.memory_space<vmem>>, vector<1x256xf32>
    %29 = vector.broadcast %27 : vector<128x1xf32> to vector<128x256xf32>
    %30 = vector.broadcast %28 : vector<1x256xf32> to vector<128x256xf32>
    %31 = arith.mulf %29, %30 : vector<128x256xf32>
    %32 = arith.addf %26, %31 : vector<128x256xf32>
    %c0_9 = arith.constant 0 : index
    %c0_10 = arith.constant 0 : index
    %33 = vector.load %arg5[%c0_9, %c0_10] : memref<1x256xf32, #tpu.memory_space<vmem>>, vector<1x256xf32>
    %34 = vector.broadcast %33 : vector<1x256xf32> to vector<128x256xf32>
    %35 = arith.addf %32, %34 : vector<128x256xf32>
    %cst_11 = arith.constant 0.000000e+00 : f32
    %36 = vector.broadcast %cst_11 : f32 to vector<128x256xf32>
    %37 = arith.maximumf %35, %36 : vector<128x256xf32>
    %38 = arith.truncf %37 : vector<128x256xf32> to vector<128x256xbf16>
    %c0_12 = arith.constant 0 : index
    %c0_13 = arith.constant 0 : index
    %39 = vector.load %arg6[%c0_12, %c0_13] : memref<1x256xbf16, #tpu.memory_space<vmem>>, vector<1x256xbf16>
    %cst_14 = arith.constant dense<0.000000e+00> : vector<1x128xf32>
    %40 = tpu.matmul %39, %38, %cst_14 {dimension_numbers = #tpu.dot_dimension_numbers<[1], [1], [0], [0], [0, 0, 1, 0], [], []>} : vector<1x256xbf16>, vector<128x256xbf16>, vector<1x128xf32> -> vector<1x128xf32>
    %c0_15 = arith.constant 0 : index
    %c0_16 = arith.constant 0 : index
    %41 = vector.load %arg7[%c0_15, %c0_16] : memref<1x1xf32, #tpu.memory_space<vmem>>, vector<1x1xf32>
    %42 = vector.broadcast %41 : vector<1x1xf32> to vector<1x128xf32>
    %43 = arith.addf %40, %42 : vector<1x128xf32>
    %c0_17 = arith.constant 0 : index
    %c0_18 = arith.constant 0 : index
    %44 = vector.load %arg8[%c0_17, %c0_18] : memref<1x128xf32, #tpu.memory_space<vmem>>, vector<1x128xf32>
    tpu.vector_store %arg8[%c0_17, %c0_18], %43 {strides = array<i32>} : memref<1x128xf32, #tpu.memory_space<vmem>>, vector<1x128xf32>,
    return
  }
  func.func @transform_0(%arg0: i32) -> (i32, i32) {
    %c0_i32 = arith.constant 0 : i32
    %c0_i32_0 = arith.constant 0 : i32
    return %arg0, %c0_i32 : i32, i32
  }
  func.func @transform_1(%arg0: i32) -> (i32, i32) {
    %c0_i32 = arith.constant 0 : i32
    %c0_i32_0 = arith.constant 0 : i32
    return %arg0, %c0_i32 : i32, i32
  }
  func.func @transform_2(%arg0: i32) -> (i32, i32) {
    %c0_i32 = arith.constant 0 : i32
    %c0_i32_0 = arith.constant 0 : i32
    %c0_i32_1 = arith.constant 0 : i32
    return %c0_i32, %c0_i32_0 : i32, i32
  }
  func.func @transform_3(%arg0: i32) -> (i32, i32) {
    %c0_i32 = arith.constant 0 : i32
    %c0_i32_0 = arith.constant 0 : i32
    %c0_i32_1 = arith.constant 0 : i32
    return %c0_i32, %c0_i32_0 : i32, i32
  }
  func.func @transform_4(%arg0: i32) -> (i32, i32) {
    %c0_i32 = arith.constant 0 : i32
    %c0_i32_0 = arith.constant 0 : i32
    %c0_i32_1 = arith.constant 0 : i32
    return %c0_i32, %c0_i32_0 : i32, i32
  }
  func.func @transform_5(%arg0: i32) -> (i32, i32) {
    %c0_i32 = arith.constant 0 : i32
    %c0_i32_0 = arith.constant 0 : i32
    %c0_i32_1 = arith.constant 0 : i32
    return %c0_i32, %c0_i32_0 : i32, i32
  }
  func.func @transform_6(%arg0: i32) -> (i32, i32) {
    %c0_i32 = arith.constant 0 : i32
    %c0_i32_0 = arith.constant 0 : i32
    %c0_i32_1 = arith.constant 0 : i32
    return %c0_i32, %c0_i32_0 : i32, i32
  }
  func.func @transform_7(%arg0: i32) -> (i32, i32) {
    %c0_i32 = arith.constant 0 : i32
    %c0_i32_0 = arith.constant 0 : i32
    return %c0_i32, %arg0 : i32, i32
  }
}

</mosaic_0001>

<bundles_post_ra>
// kernel: tpu_custom_call.1
= control target key start
LH: loop header
LB: loop body
LE: loop exit
PB: predicated region body
PF: predicated region fallthrough
CT: control target
= control target key end

     0   :  { %s1723_s0 = inlined_call_operand.vmem [shape: s32[128,5], index: 0, kind: input, shape index: {}]   ;;  %s1724_s1 = inlined_call_operand.vmem [shape: f32[128,1], index: 1, kind: input, shape index: {}]   ;;  %s1725_s2 = inlined_call_operand.vmem [shape: bf16[128,256], index: 2, kind: input, shape index: {}]   ;;  %s1726_s3 = inlined_call_operand.vmem [shape: f32[1,256], index: 3, kind: input, shape index: {}]   ;;  %s1727_s4 = inlined_call_operand.vmem [shape: f32[1,256], index: 4, kind: input, shape index: {}]   ;;  %s1728_s5 = inlined_call_operand.vmem [shape: bf16[1,256], index: 5, kind: input, shape index: {}]   ;;  %s1729_s6 = inlined_call_operand.<no memory space> [shape: f32[1,1], index: 6, kind: input, shape index: {}]   ;;  %s1730_s7 = inlined_call_operand.hbm [shape: f32[1,128], index: 7, kind: output, shape index: {}]  }
   0x1   :  { %v12_v0 = vstv %s1729_s6 }
   0x2   :  { %13 = vst [vmem:[#allocation2] sm:$0x1] %v12_v0 }
   0x3   :  { %v1165_v1 = vld [vmem:[%s1723_s0] sm:$0xff]  ;;  %v1111_v2 = vmov 1   ;;  %v1112_v3 = vmov 0   ;;  %v31_v4 = vld [vmem:[%s1723_s0 + $0x8] sm:$0xff]  ;;  %v33_v5 = vld [vmem:[%s1723_s0 + $0x18] sm:$0xff]  ;;  %v1113_v6 = vmov 2  }
   0x4   :  { %1014 = vset.pattern.permute.xlu1 %v1111_v2  ;;  %1013 = vset.pattern.permute.xlu0 %v1112_v3 }
   0x5   :  { %113 = vperm.xlu1 %1014, %v1165_v1   ;;  %49 = vperm.xlu0 %1013, %v1165_v1  }
   0x6   :  { %724 = vmatprep.mubr.bf16.mxu0 %v1112_v3 }
   0x9   :  { %116 = vperm.xlu1 %1014, %v31_v4   ;;  %52 = vperm.xlu0 %1013, %v31_v4  }
   0xd   :  { %1015 = vset.pattern.permute.xlu1 %v1113_v6  ;;  %1020 = vset.pattern.permute.xlu0 %v1111_v2 }
   0xe   :  { %14 = vsyncpa [#allocation4], 0  ;;  %196 = vperm.xlu1 %1015, %v31_v4   ;;  %122 = vperm.xlu0 %1020, %v33_v5   ;;  %v1183_v7 = vld [vmem:[%s1723_s0 + $0x20] sm:$0xff]  ;;  %v1114_v8 = vmov 3   ;;  %v1115_v9 = vmov 4   ;;  %v1194_v10 = vld [vmem:[%s1723_s0 + $0x10] sm:$0xff]  ;;  %v46_v56 = vlaneseq }
   0xf   :  { %v1200_v11 = vld [vmem:[%s1723_s0 + $0x38] sm:$0xff]  ;;  %v1063_v12 = vld [vmem:[%s1725_s2 + $0x4] ss:$8 sps:$4 sm:$0xff]   ;;  %v1065_v13 = vld [vmem:[%s1725_s2] ss:$8 sps:$4 sm:$0xff]  }
  0x10   :  { %v1213_v14 = vld [vmem:[%s1723_s0 + $0x40] sm:$0xff]  ;;  %692 = vmatprep.subr.bf16.mxu0 %v1063_v12  ;;  %v1066_v15 = vld [vmem:[%s1725_s2 + $0x14] ss:$8 sps:$4 sm:$0xff]   ;;  %v1068_v16 = vld [vmem:[%s1725_s2 + $0x10] ss:$8 sps:$4 sm:$0xff]   ;;  %v1388_v59 = vand.u32 127, %v46_v56 }
  0x11   :  { %693 = vmatpush1.bf16.msra.mxu0 %v1065_v13  ;;  %v1069_v17 = vld [vmem:[%s1725_s2 + $0x24] ss:$8 sps:$4 sm:$0xff]   ;;  %v1071_v18 = vld [vmem:[%s1725_s2 + $0x20] ss:$8 sps:$4 sm:$0xff]   ;;  %v1072_v19 = vld [vmem:[%s1725_s2 + $0x34] ss:$8 sps:$4 sm:$0xff]  }
  0x12   :  { %1016 = vset.pattern.permute.xlu1 %v1114_v8  ;;  %125 = vperm.xlu0 %1020, %v1183_v7   ;;  %v1074_v20 = vld [vmem:[%s1725_s2 + $0x30] ss:$8 sps:$4 sm:$0xff]   ;;  %v1243_v21 = vld [vmem:[%s1723_s0 + $0x48] sm:$0xff]  ;;  %v1078_v25 = vld [vmem:[%s1725_s2 + $0x54] ss:$8 sps:$4 sm:$0xff]  }
  0x13   :  { %273 = vperm.xlu1 %1016, %v1165_v1   ;;  %694 = vmatprep.subr.bf16.mxu0 %v1066_v15  ;;  %v1075_v22 = vld [vmem:[%s1725_s2 + $0x44] ss:$8 sps:$4 sm:$0xff]   ;;  %v1077_v23 = vld [vmem:[%s1725_s2 + $0x40] ss:$8 sps:$4 sm:$0xff]   ;;  %v1255_v24 = vld [vmem:[%s1723_s0 + $0x50] sm:$0xff] }
  0x14   :  { %v1080_v26 = vld [vmem:[%s1725_s2 + $0x50] ss:$8 sps:$4 sm:$0xff]   ;;  %v1081_v27 = vld [vmem:[%s1725_s2 + $0x64] ss:$8 sps:$4 sm:$0xff]   ;;  %v1083_v28 = vld [vmem:[%s1725_s2 + $0x60] ss:$8 sps:$4 sm:$0xff]  }
  0x15   :  { %695 = vmatpush1.bf16.msra.mxu0 %v1068_v16  ;;  %v35_v29 = vld [vmem:[%s1723_s0 + $0x28] sm:$0xff]  ;;  %v1084_v30 = vld [vmem:[%s1725_s2 + $0x74] ss:$8 sps:$4 sm:$0xff]   ;;  %v1086_v31 = vld [vmem:[%s1725_s2 + $0x70] ss:$8 sps:$4 sm:$0xff]  }
  0x16   :  { %1025 = vset.pattern.permute.xlu0 %v1114_v8  ;;  %696 = vmatprep.subr.bf16.mxu0 %v1069_v17  ;;  %v36_v32 = vld [vmem:[%s1723_s0 + $0x30] sm:$0xff]  ;;  %v1292_v33 = vld [vmem:[%s1723_s0 + $0x58] sm:$0xff]  ;;  %v1299_v34 = vld [vmem:[%s1723_s0 + $0x60] sm:$0xff] }
  0x17   :  { %1017 = vset.pattern.permute.xlu1 %v1115_v9  ;;  %276 = vperm.xlu0 %1025, %v31_v4   ;;  %v1313_v35 = vld [vmem:[%s1723_s0 + $0x68] sm:$0xff]  ;;  %v1320_v36 = vld [vmem:[%s1723_s0 + $0x70] sm:$0xff]  ;;  %v1332_v37 = vld [vmem:[%s1723_s0 + $0x78] sm:$0xff] }
  0x18   :  { %353 = vperm.xlu1 %1017, %v1165_v1   ;;  %v474_v55 = vld [vmem:[%s1724_s1 + $0x10] sm:$0xff]  ;;  %v477_v0 = vld [vmem:[%s1724_s1 + $0x28] sm:$0xff] }
  0x19   :  { %697 = vmatpush1.bf16.msra.mxu0 %v1071_v18 }
  0x1a   :  { %698 = vmatprep.subr.bf16.mxu0 %v1072_v19 }
  0x1b   :  { %279 = vperm.xlu0 %1025, %v1194_v10  }
  0x1c   :  { %356 = vperm.xlu1 %1017, %v31_v4  }
  0x1d   :  { %699 = vmatpush1.bf16.msra.mxu0 %v1074_v20 }
  0x1e   :  { %700 = vmatprep.subr.bf16.mxu0 %v1075_v22 }
  0x1f   :  { %294 = vperm.xlu0 %1025, %v1200_v11  }
  0x20   :  { %1018 = vset.pattern.permute.xlu1 %v1112_v3 }
  0x21   :  { %58 = vperm.xlu1 %1018, %v33_v5   ;;  %701 = vmatpush1.bf16.msra.mxu0 %v1077_v23  ;;  %v479_v23 = vld [vmem:[%s1724_s1 + $0x38] sm:$0xff] }
  0x22   :  { %702 = vmatprep.subr.bf16.mxu0 %v1078_v25 }
  0x23   :  { %297 = vperm.xlu0 %1025, %v1213_v14  }
  0x25   :  { %1019 = vset.pattern.permute.xlu1 %v1111_v2  ;;  %703 = vmatpush1.bf16.msra.mxu0 %v1080_v26 }
  0x26   :  { %119 = vperm.xlu1 %1019, %v1194_v10   ;;  %704 = vmatprep.subr.bf16.mxu0 %v1081_v27 }
  0x27   :  { %1038 = vset.pattern.permute.xlu0 %v1115_v9 }
  0x28   :  { %362 = vperm.xlu0 %1038, %v33_v5  }
  0x29   :  { %705 = vmatpush1.bf16.msra.mxu0 %v1083_v28 }
  0x2a   :  { %1021 = vset.pattern.permute.xlu1 %v1113_v6  ;;  %706 = vmatprep.subr.bf16.mxu0 %v1084_v30 }
  0x2b   :  { %199 = vperm.xlu1 %1021, %v1194_v10  }
  0x2c   :  { %365 = vperm.xlu0 %1038, %v1183_v7  }
  0x2d   :  { %707 = vmatpush1.bf16.msra.mxu0 %v1086_v31 }
  0x2f   :  { %202 = vperm.xlu1 %1021, %v33_v5  }
  0x30   :  { %380 = vperm.xlu0 %1038, %v1243_v21  }
  0x33   :  { %1022 = vset.pattern.permute.xlu1 %v1114_v8 }
  0x34   :  { %282 = vperm.xlu1 %1022, %v33_v5   ;;  %383 = vperm.xlu0 %1038, %v1255_v24  }
  0x38   :  { %1023 = vset.pattern.permute.xlu1 %v1115_v9  ;;  %1045 = vset.pattern.permute.xlu0 %v1113_v6 }
  0x39   :  { %359 = vperm.xlu1 %1023, %v1194_v10   ;;  %193 = vperm.xlu0 %1045, %v1165_v1  }
  0x3d   :  { %1024 = vset.pattern.permute.xlu1 %v1112_v3  ;;  %208 = vperm.xlu0 %1045, %v35_v29  }
  0x3e   :  { %61 = vperm.xlu1 %1024, %v1183_v7  }
  0x41   :  { %211 = vperm.xlu0 %1045, %v36_v32  }
  0x42   :  { %64 = vperm.xlu1 %1024, %v35_v29  }
  0x45   :  { %226 = vperm.xlu0 %1045, %v1292_v33  }
  0x46   :  { %1026 = vset.pattern.permute.xlu1 %v1111_v2 }
  0x47   :  { %128 = vperm.xlu1 %1026, %v35_v29  }
  0x49   :  { %229 = vperm.xlu0 %1045, %v1299_v34  }
  0x4b   :  { %1027 = vset.pattern.permute.xlu1 %v1113_v6 }
  0x4c   :  { %205 = vperm.xlu1 %1027, %v1183_v7  }
  0x4d   :  { %1049 = vset.pattern.permute.xlu0 %v1112_v3 }
  0x4e   :  { %55 = vperm.xlu0 %1049, %v1194_v10  }
  0x50   :  { %1028 = vset.pattern.permute.xlu1 %v1114_v8 }
  0x51   :  { %285 = vperm.xlu1 %1028, %v1183_v7   ;;  %v1116_v7 = vmov 0.0  }
  0x52   :  { %70 = vperm.xlu0 %1049, %v1200_v11  }
  0x55   :  { %288 = vperm.xlu1 %1028, %v35_v29  }
  0x56   :  { %73 = vperm.xlu0 %1049, %v1213_v14  }
  0x59   :  { %1029 = vset.pattern.permute.xlu1 %v1115_v9 }
  0x5a   :  { %368 = vperm.xlu1 %1029, %v35_v29   ;;  %88 = vperm.xlu0 %1049, %v1313_v35  }
  0x5e   :  { %1030 = vset.pattern.permute.xlu1 %v1112_v3  ;;  %91 = vperm.xlu0 %1049, %v1320_v36  }
  0x5f   :  { %67 = vperm.xlu1 %1030, %v36_v32  }
  0x62   :  { %1053 = vset.pattern.permute.xlu0 %v1111_v2 }
  0x63   :  { %1031 = vset.pattern.permute.xlu1 %v1111_v2  ;;  %140 = vperm.xlu0 %1053, %v1243_v21  }
  0x64   :  { %131 = vperm.xlu1 %1031, %v36_v32  }
  0x67   :  { %143 = vperm.xlu0 %1053, %v1255_v24  }
  0x68   :  { %134 = vperm.xlu1 %1031, %v1200_v11  }
  0x6b   :  { %158 = vperm.xlu0 %1053, %v1332_v37  }
  0x6c   :  { %1032 = vset.pattern.permute.xlu1 %v1113_v6 }
  0x6d   :  { %214 = vperm.xlu1 %1032, %v1200_v11  }
  0x6f   :  { %1056 = vset.pattern.permute.xlu0 %v1114_v8 }
  0x70   :  { %312 = vperm.xlu0 %1056, %v1313_v35  }
  0x71   :  { %1033 = vset.pattern.permute.xlu1 %v1114_v8 }
  0x72   :  { %291 = vperm.xlu1 %1033, %v36_v32  }
  0x74   :  { %315 = vperm.xlu0 %1056, %v1320_v36  }
  0x76   :  { %1034 = vset.pattern.permute.xlu1 %v1115_v9 }
  0x77   :  { %371 = vperm.xlu1 %1034, %v36_v32  }
  0x78   :  { %1060 = vset.pattern.permute.xlu0 %v1115_v9 }
  0x79   :  { %398 = vperm.xlu0 %1060, %v1332_v37  }
  0x7b   :  { %374 = vperm.xlu1 %1034, %v1200_v11  }
  0x7d   :  { %1062 = vset.pattern.permute.xlu0 %v1112_v3 }
  0x7e   :  { %501 = vperm.xlu0 %1062, %v474_v55   ;;  %v480_v55 = vld [vmem:[%s1724_s1 + $0x40] sm:$0xff] }
  0x7f   :  { %1035 = vset.pattern.permute.xlu1 %v1112_v3 }
  0x80   :  { %76 = vperm.xlu1 %1035, %v1243_v21  }
  0x82   :  { %516 = vperm.xlu0 %1062, %v477_v0  }
  0x84   :  { %1036 = vset.pattern.permute.xlu1 %v1111_v2  ;;  %v114_v38 = vpop.permute.xlu1 %113  ;;  %v50_v39 = vpop.permute.xlu0 %49 }
  0x85   :  { %137 = vperm.xlu1 %1036, %v1213_v14   ;;  %vm160_vm0 = vcmp.eq.s32.totalorder %v1388_v59, %v114_v38  ;;  %vm96_vm1 = vcmp.eq.s32.totalorder %v1388_v59, %v50_v39 }
  0x86   :  { %vm176_vm5 = vmor %vm96_vm1, %vm160_vm0  ;;  %526 = vperm.xlu0 %1062, %v479_v23  }
  0x88   :  { %v117_v40 = vpop.permute.xlu1 %116  ;;  %v53_v41 = vpop.permute.xlu0 %52 }
  0x89   :  { %1037 = vset.pattern.permute.xlu1 %v1113_v6  ;;  %vm161_vm2 = vcmp.eq.s32.totalorder %v1388_v59, %v117_v40  ;;  %vm97_vm3 = vcmp.eq.s32.totalorder %v1388_v59, %v53_v41  ;;  %v473_v41 = vld [vmem:[%s1724_s1 + $0x8] sm:$0xff] }
  0x8a   :  { %217 = vperm.xlu1 %1037, %v1213_v14   ;;  %vm177_vm7 = vmor %vm97_vm3, %vm161_vm2 }
  0x8d   :  { %v197_v42 = vpop.permute.xlu1 %196  ;;  %v1352_v43 = vpop.permute.xlu0 %122 }
  0x8e   :  { %220 = vperm.xlu1 %1037, %v1243_v21   ;;  %vm241_vm4 = vcmp.eq.s32.totalorder %v1388_v59, %v197_v42  ;;  %vm163_vm2 = vcmp.eq.s32.totalorder %v1388_v59, %v1352_v43  ;;  %v483_v42 = vld [vmem:[%s1724_s1 + $0x58] sm:$0xff] }
  0x8f   :  { %vm257_vm9 = vmor %vm177_vm7, %vm241_vm4 }
  0x91   :  { %v1355_v44 = vpop.permute.xlu0 %125 }
  0x92   :  { %1039 = vset.pattern.permute.xlu1 %v1114_v8  ;;  %v274_v45 = vpop.permute.xlu1 %273 }
  0x93   :  { %300 = vperm.xlu1 %1039, %v1243_v21   ;;  %vm320_vm13 = vcmp.eq.s32.totalorder %v1388_v59, %v274_v45 }
  0x96   :  { %v277_v46 = vpop.permute.xlu0 %276 }
  0x97   :  { %1040 = vset.pattern.permute.xlu1 %v1115_v9  ;;  %v354_v47 = vpop.permute.xlu1 %353  ;;  %vm321_vm6 = vcmp.eq.s32.totalorder %v1388_v59, %v277_v46  ;;  %v475_v46 = vld [vmem:[%s1724_s1 + $0x18] sm:$0xff] }
  0x98   :  { %377 = vperm.xlu1 %1040, %v1213_v14   ;;  %vm337_vm10 = vmor %vm257_vm9, %vm321_vm6  ;;  %vm400_vm15 = vcmp.eq.s32.totalorder %v1388_v59, %v354_v47 }
  0x9a   :  { %v1361_v48 = vpop.permute.xlu0 %279 }
  0x9b   :  { %v357_v49 = vpop.permute.xlu1 %356 }
  0x9c   :  { %1041 = vset.pattern.permute.xlu1 %v1112_v3  ;;  %vm401_vm8 = vcmp.eq.s32.totalorder %v1388_v59, %v357_v49  ;;  %v476_v49 = vld [vmem:[%s1724_s1 + $0x20] sm:$0xff] }
  0x9d   :  { %79 = vperm.xlu1 %1041, %v1255_v24   ;;  %vm417_vm11 = vmor %vm337_vm10, %vm401_vm8  ;;  %vm322_vm10 = vcmp.eq.s32.totalorder %v1388_v59, %v1361_v48 }
  0x9e   :  { %v1365_v50 = vpop.permute.xlu0 %294  ;;  %v433_v10 = vsel %vm417_vm11, 1.0, %v1116_v7 }
  0xa0   :  { %v1367_v51 = vpop.permute.xlu1 %58 }
  0xa1   :  { %82 = vperm.xlu1 %1041, %v1292_v33   ;;  %vm99_vm3 = vcmp.eq.s32.totalorder %v1388_v59, %v1367_v51  ;;  %v478_v51 = vld [vmem:[%s1724_s1 + $0x30] sm:$0xff] }
  0xa2   :  { %v1370_v52 = vpop.permute.xlu0 %297  ;;  %vm179_vm6 = vmor %vm99_vm3, %vm163_vm2 }
  0xa5   :  { %1042 = vset.pattern.permute.xlu1 %v1111_v2  ;;  %v1373_v53 = vpop.permute.xlu1 %119 }
  0xa6   :  { %146 = vperm.xlu1 %1042, %v1292_v33   ;;  %vm162_vm11 = vcmp.eq.s32.totalorder %v1388_v59, %v1373_v53 }
  0xa7   :  { %v1376_v54 = vpop.permute.xlu0 %362 }
  0xa8   :  { %vm403_vm8 = vcmp.eq.s32.totalorder %v1388_v59, %v1376_v54 }
  0xaa   :  { %1043 = vset.pattern.permute.xlu1 %v1113_v6  ;;  %v1382_v57 = vpop.permute.xlu1 %199 }
  0xab   :  { %223 = vperm.xlu1 %1043, %v1255_v24   ;;  %v1385_v58 = vpop.permute.xlu0 %365 }
  0xae   :  { %v203_v60 = vpop.permute.xlu1 %202 }
  0xaf   :  { %1044 = vset.pattern.permute.xlu1 %v1114_v8  ;;  %v1391_v61 = vpop.permute.xlu0 %380  ;;  %vm243_vm4 = vcmp.eq.s32.totalorder %v1388_v59, %v203_v60  ;;  %v484_v60 = vld [vmem:[%s1724_s1 + $0x60] sm:$0xff] }
  0xb0   :  { %303 = vperm.xlu1 %1044, %v1255_v24   ;;  %vm259_vm7 = vmor %vm179_vm6, %vm243_vm4 }
  0xb3   :  { %v283_v62 = vpop.permute.xlu1 %282  ;;  %v1398_v63 = vpop.permute.xlu0 %383 }
  0xb4   :  { %306 = vperm.xlu1 %1044, %v1292_v33  }
  0xb8   :  { %1046 = vset.pattern.permute.xlu1 %v1115_v9  ;;  %v360_v1 = vpop.permute.xlu1 %359  ;;  %v194_v4 = vpop.permute.xlu0 %193 }
  0xb9   :  { %vm240_vm12 = vcmp.eq.s32.totalorder %v1388_v59, %v194_v4  ;;  %386 = vperm.xlu1 %1046, %v1292_v33   ;;  %vm402_vm3 = vcmp.eq.s32.totalorder %v1388_v59, %v360_v1  ;;  %v485_v1 = vld [vmem:[%s1724_s1 + $0x68] sm:$0xff] }
  0xba   :  { %vm256_vm14 = vmor %vm176_vm5, %vm240_vm12  ;;  %vm323_vm5 = vcmp.eq.s32.totalorder %v1388_v59, %v283_v62 }
  0xbb   :  { %vm336_vm0 = vmor %vm256_vm14, %vm320_vm13  ;;  %vm242_vm14 = vcmp.eq.s32.totalorder %v1388_v59, %v1382_v57  ;;  %v482_v57 = vld [vmem:[%s1724_s1 + $0x50] sm:$0xff] }
  0xbc   :  { %vm416_vm1 = vmor %vm336_vm0, %vm400_vm15  ;;  %v1412_v5 = vpop.permute.xlu0 %208  ;;  %vm164_vm0 = vcmp.eq.s32.totalorder %v1388_v59, %v1355_v44 }
  0xbd   :  { %v432_v11 = vsel %vm416_vm1, 1.0, %v1116_v7  ;;  %1047 = vset.pattern.permute.xlu1 %v1112_v3  ;;  %v62_v12 = vpop.permute.xlu1 %61  ;;  %vm339_vm9 = vmor %vm259_vm7, %vm323_vm5 }
  0xbe   :  { %85 = vperm.xlu1 %1047, %v1299_v34   ;;  %v448_v13 = vpack.c.bf16 %v433_v10, %v432_v11  ;;  %vm1442_vm12 = vmor %vm339_vm9, %vm403_vm8  ;;  %vm100_vm1 = vcmp.eq.s32.totalorder %v1388_v59, %v62_v12  ;;  %v898_v10 = vld [vmem:[#allocation2] sm:$0x1]  ;;  %v487_v12 = vld [vmem:[%s1724_s1 + $0x78] sm:$0xff] }
  0xbf   :  { %v435_v24 = vsel %vm1442_vm12, 1.0, %v1116_v7  ;;  %vm180_vm9 = vmor %vm100_vm1, %vm164_vm0  ;;  %vm404_vm12 = vcmp.eq.s32.totalorder %v1388_v59, %v1385_v58 }
  0xc0   :  { %725 = vmatmul.mubr.bf16.vlgmr.msra.gmra.mrb[0].mxu0 %v448_v13  ;;  %v1418_v14 = vpop.permute.xlu0 %211 }
  0xc1   :  { %v65_v15 = vpop.permute.xlu1 %64  ;;  %734 = vmatprep.mubr.bf16.mxu0 %v1112_v3 }
  0xc2   :  { %1048 = vset.pattern.permute.xlu1 %v1111_v2  ;;  %vm101_vm8 = vcmp.eq.s32.totalorder %v1388_v59, %v65_v15 }
  0xc3   :  { %149 = vperm.xlu1 %1048, %v1299_v34  }
  0xc4   :  { %v1423_v16 = vpop.permute.xlu0 %226 }
  0xc6   :  { %v129_v17 = vpop.permute.xlu1 %128 }
  0xc7   :  { %152 = vperm.xlu1 %1048, %v1313_v35   ;;  %vm165_vm4 = vcmp.eq.s32.totalorder %v1388_v59, %v129_v17 }
  0xc8   :  { %v1432_v18 = vpop.permute.xlu0 %229 }
  0xcb   :  { %1050 = vset.pattern.permute.xlu1 %v1113_v6  ;;  %v206_v19 = vpop.permute.xlu1 %205 }
  0xcc   :  { %232 = vperm.xlu1 %1050, %v1313_v35   ;;  %vm244_vm6 = vcmp.eq.s32.totalorder %v1388_v59, %v206_v19 }
  0xcd   :  { %v56_v20 = vpop.permute.xlu0 %55 }
  0xce   :  { %vm98_vm13 = vcmp.eq.s32.totalorder %v1388_v59, %v56_v20 }
  0xcf   :  { %vm178_vm15 = vmor %vm98_vm13, %vm162_vm11  ;;  %vm245_vm13 = vcmp.eq.s32.totalorder %v1388_v59, %v1412_v5 }
  0xd0   :  { %vm258_vm2 = vmor %vm178_vm15, %vm242_vm14  ;;  %1051 = vset.pattern.permute.xlu1 %v1114_v8  ;;  %v286_v22 = vpop.permute.xlu1 %285 }
  0xd1   :  { %vm338_vm5 = vmor %vm258_vm2, %vm322_vm10  ;;  %309 = vperm.xlu1 %1051, %v1299_v34   ;;  %vm324_vm11 = vcmp.eq.s32.totalorder %v1388_v59, %v286_v22  ;;  %v71_v38 = vpop.permute.xlu0 %70 }
  0xd2   :  { %vm418_vm7 = vmor %vm338_vm5, %vm402_vm3 }
  0xd3   :  { %v434_v25 = vsel %vm418_vm7, 1.0, %v1116_v7  ;;  %vm181_vm10 = vmor %vm101_vm8, %vm165_vm4  ;;  %vm246_vm8 = vcmp.eq.s32.totalorder %v1388_v59, %v1418_v14 }
  0xd4   :  { %v289_v26 = vpop.permute.xlu1 %288  ;;  %v449_v27 = vpack.c.bf16 %v435_v24, %v434_v25  ;;  %vm260_vm14 = vmor %vm180_vm9, %vm244_vm6 }
  0xd5   :  { %1052 = vset.pattern.permute.xlu1 %v1115_v9  ;;  %vm340_vm15 = vmor %vm260_vm14, %vm324_vm11  ;;  %vm325_vm0 = vcmp.eq.s32.totalorder %v1388_v59, %v289_v26 }
  0xd6   :  { %389 = vperm.xlu1 %1052, %v1299_v34   ;;  %735 = vmatmul.mubr.bf16.gmra.mrb[4].mxu0 %v449_v27  ;;  %vm261_vm1 = vmor %vm181_vm10, %vm245_vm13  ;;  %vm103_vm10 = vcmp.eq.s32.totalorder %v1388_v59, %v71_v38 }
  0xd7   :  { %744 = vmatprep.mubr.bf16.mxu0 %v1112_v3  ;;  %vm420_vm2 = vmor %vm340_vm15, %vm404_vm12 }
  0xd8   :  { %vm341_vm3 = vmor %vm261_vm1, %vm325_vm0  ;;  %v436_v29 = vsel %vm420_vm2, 1.0, %v1116_v7  ;;  %vm327_vm1 = vcmp.eq.s32.totalorder %v1388_v59, %v1365_v50 }
  0xd9   :  { %v369_v28 = vpop.permute.xlu1 %368 }
  0xda   :  { %vm405_vm4 = vcmp.eq.s32.totalorder %v1388_v59, %v369_v28  ;;  %392 = vperm.xlu1 %1052, %v1313_v35  }
  0xdb   :  { %vm421_vm5 = vmor %vm341_vm3, %vm405_vm4 }
  0xdc   :  { %v437_v30 = vsel %vm421_vm5, 1.0, %v1116_v7 }
  0xdd   :  { %v450_v31 = vpack.c.bf16 %v437_v30, %v436_v29 }
  0xde   :  { %1054 = vset.pattern.permute.xlu1 %v1112_v3  ;;  %v68_v32 = vpop.permute.xlu1 %67 }
  0xdf   :  { %94 = vperm.xlu1 %1054, %v1332_v37   ;;  %745 = vmatmul.mubr.bf16.gmra.mrb[8].mxu0 %v450_v31  ;;  %vm102_vm7 = vcmp.eq.s32.totalorder %v1388_v59, %v68_v32 }
  0xe0   :  { %754 = vmatprep.mubr.bf16.mxu0 %v1112_v3 }
  0xe3   :  { %1055 = vset.pattern.permute.xlu1 %v1111_v2  ;;  %v132_v33 = vpop.permute.xlu1 %131  ;;  %v481_v2 = vld [vmem:[%s1724_s1 + $0x48] sm:$0xff] }
  0xe4   :  { %155 = vperm.xlu1 %1055, %v1320_v36   ;;  %vm166_vm6 = vcmp.eq.s32.totalorder %v1388_v59, %v132_v33  ;;  %536 = vperm.xlu0 %1062, %v481_v2  }
  0xe5   :  { %vm182_vm9 = vmor %vm102_vm7, %vm166_vm6 }
  0xe6   :  { %vm262_vm14 = vmor %vm182_vm9, %vm246_vm8 }
  0xe7   :  { %v135_v34 = vpop.permute.xlu1 %134 }
  0xe8   :  { %1057 = vset.pattern.permute.xlu1 %v1113_v6  ;;  %vm167_vm11 = vcmp.eq.s32.totalorder %v1388_v59, %v135_v34  ;;  %546 = vperm.xlu0 %1062, %v483_v42  }
  0xe9   :  { %235 = vperm.xlu1 %1057, %v1320_v36   ;;  %vm183_vm15 = vmor %vm103_vm10, %vm167_vm11 }
  0xec   :  { %v215_v35 = vpop.permute.xlu1 %214  ;;  %556 = vperm.xlu0 %1062, %v485_v1  }
  0xed   :  { %238 = vperm.xlu1 %1057, %v1332_v37   ;;  %vm247_vm13 = vcmp.eq.s32.totalorder %v1388_v59, %v215_v35 }
  0xee   :  { %vm263_vm2 = vmor %vm183_vm15, %vm247_vm13 }
  0xef   :  { %vm343_vm5 = vmor %vm263_vm2, %vm327_vm1  ;;  %vm409_vm2 = vcmp.eq.s32.totalorder %v1388_v59, %v1391_v61  ;;  %v486_v61 = vld [vmem:[%s1724_s1 + $0x70] sm:$0xff] }
  0xf0   :  { %566 = vperm.xlu0 %1062, %v487_v12  }
  0xf1   :  { %1058 = vset.pattern.permute.xlu1 %v1114_v8  ;;  %v292_v39 = vpop.permute.xlu1 %291  ;;  %v74_v8 = vpop.permute.xlu0 %73 }
  0xf2   :  { %318 = vperm.xlu1 %1058, %v1332_v37   ;;  %vm326_vm12 = vcmp.eq.s32.totalorder %v1388_v59, %v292_v39  ;;  %v472_v37 = vld [vmem:[%s1724_s1] sm:$0xff]  ;;  %vm104_vm11 = vcmp.eq.s32.totalorder %v1388_v59, %v74_v8 }
  0xf3   :  { %vm342_vm3 = vmor %vm262_vm14, %vm326_vm12 }
  0xf5   :  { %v1517_v44 = vpop.permute.xlu0 %88 }
  0xf6   :  { %1059 = vset.pattern.permute.xlu1 %v1115_v9  ;;  %v372_v6 = vpop.permute.xlu1 %371 }
  0xf7   :  { %vm406_vm0 = vcmp.eq.s32.totalorder %v1388_v59, %v372_v6  ;;  %395 = vperm.xlu1 %1059, %v1320_v36  }
  0xf8   :  { %vm422_vm4 = vmor %vm342_vm3, %vm406_vm0 }
  0xf9   :  { %v438_v9 = vsel %vm422_vm4, 1.0, %v1116_v7  ;;  %v1523_v48 = vpop.permute.xlu0 %91  ;;  %vm328_vm4 = vcmp.eq.s32.totalorder %v1388_v59, %v1370_v52 }
  0xfa   :  { %v375_v40 = vpop.permute.xlu1 %374 }
  0xfb   :  { %vm407_vm6 = vcmp.eq.s32.totalorder %v1388_v59, %v375_v40  ;;  %1061 = vset.pattern.permute.xlu1 %v1112_v3 }
  0xfc   :  { %vm423_vm7 = vmor %vm343_vm5, %vm407_vm6  ;;  %491 = vperm.xlu1 %1061, %v472_v37  }
  0xfd   :  { %v439_v36 = vsel %vm423_vm7, 1.0, %v1116_v7  ;;  %v141_v53 = vpop.permute.xlu0 %140 }
  0xfe   :  { %v451_v43 = vpack.c.bf16 %v439_v36, %v438_v9  ;;  %vm169_vm9 = vcmp.eq.s32.totalorder %v1388_v59, %v141_v53  ;;  %v1608_v9 = vshrl.u32 %v46_v56, 7  ;;  %v805_v56 = vld [vmem:[%s1727_s4] sm:$0x3] }
  0xff   :  { %v77_v45 = vpop.permute.xlu1 %76 }
 0x100   :  { %755 = vmatmul.mubr.bf16.gmra.mrb[12].mxu0 %v451_v43  ;;  %496 = vperm.xlu1 %1061, %v473_v41   ;;  %vm105_vm8 = vcmp.eq.s32.totalorder %v1388_v59, %v77_v45  ;;  %v1611_v36 = vsub.s32 0, %v1608_v9  ;;  %v488_v41 = vld [vmem:[%s1726_s3] sm:$0x3]  ;;  %v576_v42 = vsub.s32 1, %v1608_v9 }
 0x101   :  { %764 = vmatprep.mubr.bf16.mxu0 %v1112_v3  ;;  %vm185_vm14 = vmor %vm105_vm8, %vm169_vm9  ;;  %v144_v15 = vpop.permute.xlu0 %143 }
 0x102   :  { %v1618_v43 = vrot.slane %v488_v41, %v1611_v36 }
 0x104   :  { %v138_v47 = vpop.permute.xlu1 %137  ;;  %506 = vperm.xlu1 %1061, %v475_v46  }
 0x105   :  { %vm168_vm10 = vcmp.eq.s32.totalorder %v1388_v59, %v138_v47 }
 0x106   :  { %vm184_vm12 = vmor %vm104_vm11, %vm168_vm10  ;;  %vm170_vm10 = vcmp.eq.s32.totalorder %v1388_v59, %v144_v15 }
 0x108   :  { %511 = vperm.xlu1 %1061, %v476_v49  }
 0x109   :  { %v218_v50 = vpop.permute.xlu1 %217 }
 0x10a   :  { %vm248_vm15 = vcmp.eq.s32.totalorder %v1388_v59, %v218_v50 }
 0x10b   :  { %vm264_vm5 = vmor %vm184_vm12, %vm248_vm15 }
 0x10c   :  { %521 = vperm.xlu1 %1061, %v478_v51   ;;  %vm344_vm7 = vmor %vm264_vm5, %vm328_vm4  ;;  %v1632_v51 = vrot.slane %v805_v56, %v576_v42 }
 0x10d   :  { %v221_v54 = vpop.permute.xlu1 %220 }
 0x10e   :  { %vm249_vm13 = vcmp.eq.s32.totalorder %v1388_v59, %v221_v54 }
 0x10f   :  { %vm265_vm0 = vmor %vm185_vm14, %vm249_vm13 }
 0x110   :  { %531 = vperm.xlu1 %1061, %v480_v55  }
 0x112   :  { %v301_v58 = vpop.permute.xlu1 %300 }
 0x113   :  { %vm329_vm1 = vcmp.eq.s32.totalorder %v1388_v59, %v301_v58 }
 0x114   :  { %vm345_vm3 = vmor %vm265_vm0, %vm329_vm1  ;;  %541 = vperm.xlu1 %1061, %v482_v57  }
 0x115   :  { %vm425_vm6 = vmor %vm345_vm3, %vm409_vm2  ;;  %vm251_vm2 = vcmp.eq.s32.totalorder %v1388_v59, %v1423_v16 }
 0x116   :  { %v441_v0 = vsel %vm425_vm6, 1.0, %v1116_v7  ;;  %vm410_vm6 = vcmp.eq.s32.totalorder %v1388_v59, %v1398_v63  ;;  %v159_v63 = vpop.permute.xlu0 %158 }
 0x117   :  { %v378_v62 = vpop.permute.xlu1 %377 }
 0x118   :  { %vm408_vm8 = vcmp.eq.s32.totalorder %v1388_v59, %v378_v62  ;;  %551 = vperm.xlu1 %1061, %v484_v60  }
 0x119   :  { %vm424_vm9 = vmor %vm344_vm7, %vm408_vm8 }
 0x11a   :  { %v440_v52 = vsel %vm424_vm9, 1.0, %v1116_v7  ;;  %v313_v28 = vpop.permute.xlu0 %312 }
 0x11b   :  { %v452_v4 = vpack.c.bf16 %v441_v0, %v440_v52 }
 0x11c   :  { %v80_v5 = vpop.permute.xlu1 %79  ;;  %561 = vperm.xlu1 %1061, %v486_v61  }
 0x11d   :  { %765 = vmatmul.mubr.bf16.gmra.mrb[16].mxu0 %v452_v4  ;;  %vm106_vm11 = vcmp.eq.s32.totalorder %v1388_v59, %v80_v5 }
 0x11e   :  { %774 = vmatprep.mubr.bf16.mxu0 %v1112_v3  ;;  %vm186_vm12 = vmor %vm106_vm11, %vm170_vm10  ;;  %v316_v38 = vpop.permute.xlu0 %315 }
 0x120   :  { %v83_v11 = vpop.permute.xlu1 %82  ;;  %901 = vperm.xlu1 %1061, %v898_v10  }
 0x121   :  { %vm107_vm15 = vcmp.eq.s32.totalorder %v1388_v59, %v83_v11 }
 0x122   :  { %v399_v2 = vpop.permute.xlu0 %398 }
 0x125   :  { %v147_v13 = vpop.permute.xlu1 %146 }
 0x126   :  { %vm171_vm13 = vcmp.eq.s32.totalorder %v1388_v59, %v147_v13 }
 0x127   :  { %vm187_vm1 = vmor %vm107_vm15, %vm171_vm13 }
 0x128   :  { %vm267_vm7 = vmor %vm187_vm1, %vm251_vm2  ;;  %vm109_vm2 = vcmp.eq.s32.totalorder %v1388_v59, %v1517_v44  ;;  %v1620_v44 = vrot.slane %v488_v41, %v576_v42 }
 0x12a   :  { %v224_v14 = vpop.permute.xlu1 %223 }
 0x12b   :  { %vm250_vm14 = vcmp.eq.s32.totalorder %v1388_v59, %v224_v14  ;;  %v502_v14 = vpop.permute.xlu0 %501 }
 0x12c   :  { %vm266_vm3 = vmor %vm186_vm12, %vm250_vm14 }
 0x12f   :  { %v304_v17 = vpop.permute.xlu1 %303 }
 0x130   :  { %vm330_vm0 = vcmp.eq.s32.totalorder %v1388_v59, %v304_v17  ;;  %v584_v17 = vmul.f32 %v1618_v43, %v502_v14 }
 0x131   :  { %vm346_vm4 = vmor %vm266_vm3, %vm330_vm0  ;;  %vm252_vm0 = vcmp.eq.s32.totalorder %v1388_v59, %v1432_v18 }
 0x132   :  { %vm426_vm8 = vmor %vm346_vm4, %vm410_vm6 }
 0x133   :  { %v307_v19 = vpop.permute.xlu1 %306  ;;  %v442_v21 = vsel %vm426_vm8, 1.0, %v1116_v7  ;;  %vm333_vm8 = vcmp.eq.s32.totalorder %v1388_v59, %v313_v28 }
 0x134   :  { %vm331_vm5 = vcmp.eq.s32.totalorder %v1388_v59, %v307_v19  ;;  %v585_v19 = vmul.f32 %v1620_v44, %v502_v14 }
 0x135   :  { %vm347_vm9 = vmor %vm267_vm7, %vm331_vm5 }
 0x138   :  { %v387_v20 = vpop.permute.xlu1 %386 }
 0x139   :  { %vm411_vm11 = vcmp.eq.s32.totalorder %v1388_v59, %v387_v20 }
 0x13a   :  { %vm427_vm10 = vmor %vm347_vm9, %vm411_vm11 }
 0x13b   :  { %v443_v22 = vsel %vm427_vm10, 1.0, %v1116_v7 }
 0x13c   :  { %v453_v23 = vpack.c.bf16 %v443_v22, %v442_v21 }
 0x13d   :  { %v86_v16 = vpop.permute.xlu1 %85 }
 0x13e   :  { %775 = vmatmul.mubr.bf16.gmra.mrb[20].mxu0 %v453_v23  ;;  %vm108_vm14 = vcmp.eq.s32.totalorder %v1388_v59, %v86_v16 }
 0x13f   :  { %784 = vmatprep.mubr.bf16.mxu0 %v1112_v3 }
 0x142   :  { %v150_v24 = vpop.permute.xlu1 %149 }
 0x143   :  { %vm172_vm13 = vcmp.eq.s32.totalorder %v1388_v59, %v150_v24 }
 0x144   :  { %vm188_vm12 = vmor %vm108_vm14, %vm172_vm13 }
 0x145   :  { %vm268_vm3 = vmor %vm188_vm12, %vm252_vm0  ;;  %vm175_vm0 = vcmp.eq.s32.totalorder %v1388_v59, %v159_v63 }
 0x146   :  { %v153_v25 = vpop.permute.xlu1 %152 }
 0x147   :  { %vm173_vm15 = vcmp.eq.s32.totalorder %v1388_v59, %v153_v25 }
 0x148   :  { %vm189_vm5 = vmor %vm109_vm2, %vm173_vm15  ;;  %vm110_vm2 = vcmp.eq.s32.totalorder %v1388_v59, %v1523_v48  ;;  %v1629_v48 = vrot.slane %v805_v56, %v1611_v36 }
 0x14b   :  { %v233_v26 = vpop.permute.xlu1 %232 }
 0x14c   :  { %vm253_vm1 = vcmp.eq.s32.totalorder %v1388_v59, %v233_v26 }
 0x14d   :  { %vm269_vm7 = vmor %vm189_vm5, %vm253_vm1 }
 0x14e   :  { %vm349_vm10 = vmor %vm269_vm7, %vm333_vm8 }
 0x150   :  { %v310_v27 = vpop.permute.xlu1 %309 }
 0x151   :  { %vm332_vm4 = vcmp.eq.s32.totalorder %v1388_v59, %v310_v27 }
 0x152   :  { %vm348_vm9 = vmor %vm268_vm3, %vm332_vm4 }
 0x155   :  { %v390_v29 = vpop.permute.xlu1 %389 }
 0x156   :  { %vm412_vm6 = vcmp.eq.s32.totalorder %v1388_v59, %v390_v29 }
 0x157   :  { %vm428_vm11 = vmor %vm348_vm9, %vm412_vm6  ;;  %vm415_vm9 = vcmp.eq.s32.totalorder %v1388_v59, %v399_v2 }
 0x158   :  { %v444_v18 = vsel %vm428_vm11, 1.0, %v1116_v7 }
 0x159   :  { %v393_v30 = vpop.permute.xlu1 %392 }
 0x15a   :  { %vm413_vm13 = vcmp.eq.s32.totalorder %v1388_v59, %v393_v30 }
 0x15b   :  { %vm429_vm14 = vmor %vm349_vm10, %vm413_vm13  ;;  %vm334_vm10 = vcmp.eq.s32.totalorder %v1388_v59, %v316_v38 }
 0x15c   :  { %v445_v31 = vsel %vm429_vm14, 1.0, %v1116_v7 }
 0x15d   :  { %v454_v32 = vpack.c.bf16 %v445_v31, %v444_v18  ;;  %v517_v31 = vpop.permute.xlu0 %516 }
 0x15e   :  { %v95_v33 = vpop.permute.xlu1 %94 }
 0x15f   :  { %785 = vmatmul.mubr.bf16.gmra.mrb[24].mxu0 %v454_v32  ;;  %vm111_vm12 = vcmp.eq.s32.totalorder %v1388_v59, %v95_v33 }
 0x160   :  { %794 = vmatprep.mubr.bf16.mxu0 %v1112_v3  ;;  %vm191_vm3 = vmor %vm111_vm12, %vm175_vm0 }
 0x163   :  { %v156_v34 = vpop.permute.xlu1 %155 }
 0x164   :  { %vm174_vm15 = vcmp.eq.s32.totalorder %v1388_v59, %v156_v34 }
 0x165   :  { %vm190_vm4 = vmor %vm110_vm2, %vm174_vm15 }
 0x168   :  { %v236_v35 = vpop.permute.xlu1 %235 }
 0x169   :  { %vm254_vm5 = vcmp.eq.s32.totalorder %v1388_v59, %v236_v35 }
 0x16a   :  { %vm270_vm11 = vmor %vm190_vm4, %vm254_vm5 }
 0x16b   :  { %vm350_vm14 = vmor %vm270_vm11, %vm334_vm10 }
 0x16c   :  { %v239_v39 = vpop.permute.xlu1 %238 }
 0x16d   :  { %vm255_vm1 = vcmp.eq.s32.totalorder %v1388_v59, %v239_v39 }
 0x16e   :  { %vm271_vm6 = vmor %vm191_vm3, %vm255_vm1 }
 0x171   :  { %v319_v3 = vpop.permute.xlu1 %318 }
 0x172   :  { %vm335_vm7 = vcmp.eq.s32.totalorder %v1388_v59, %v319_v3  ;;  %v590_v3 = vmul.f32 %v1618_v43, %v517_v31 }
 0x173   :  { %vm351_vm8 = vmor %vm271_vm6, %vm335_vm7 }
 0x174   :  { %vm431_vm13 = vmor %vm351_vm8, %vm415_vm9 }
 0x175   :  { %v447_v8 = vsel %vm431_vm13, 1.0, %v1116_v7 }
 0x176   :  { %v396_v6 = vpop.permute.xlu1 %395 }
 0x177   :  { %vm414_vm0 = vcmp.eq.s32.totalorder %v1388_v59, %v396_v6 }
 0x178   :  { %vm430_vm12 = vmor %vm350_vm14, %vm414_vm0 }
 0x179   :  { %v446_v37 = vsel %vm430_vm12, 1.0, %v1116_v7 }
 0x17a   :  { %v455_v40 = vpack.c.bf16 %v447_v8, %v446_v37  ;;  %v591_v8 = vmul.f32 %v1620_v44, %v517_v31 }
 0x17b   :  { %v492_v59 = vpop.permute.xlu1 %491 }
 0x17c   :  { %795 = vmatmul.mubr.bf16.gmra.mrb[28].mxu0 %v455_v40  ;;  %v580_v45 = vmul.f32 %v1618_v43, %v492_v59  ;;  %v581_v46 = vmul.f32 %v1620_v44, %v492_v59 }
 0x17f   :  { %v497_v7 = vpop.permute.xlu1 %496 }
 0x180   :  { %v582_v47 = vmul.f32 %v1618_v43, %v497_v7  ;;  %v583_v49 = vmul.f32 %v1620_v44, %v497_v7 }
 0x183   :  { %v507_v15 = vpop.permute.xlu1 %506 }
 0x184   :  { %v586_v20 = vmul.f32 %v1618_v43, %v507_v15  ;;  %v587_v21 = vmul.f32 %v1620_v44, %v507_v15 }
 0x187   :  { %v512_v28 = vpop.permute.xlu1 %511 }
 0x188   :  { %v588_v33 = vmul.f32 %v1618_v43, %v512_v28  ;;  %v589_v38 = vmul.f32 %v1620_v44, %v512_v28 }
 0x193   :  { %v726_v50 = vpop.f32.mrb[0].mxu0 }
 0x194   :  { %v727_v53 = vadd.f32 %v726_v50, %v580_v45  ;;  %v728_v54 = vpop.f32.mrb[1].mxu0 }
 0x195   :  { %v729_v55 = vadd.f32 %v728_v54, %v581_v46  ;;  %v730_v57 = vpop.f32.mrb[2].mxu0 }
 0x196   :  { %v817_v58 = vadd.f32 %v1629_v48, %v727_v53  ;;  %v731_v60 = vadd.f32 %v730_v57, %v582_v47  ;;  %v732_v62 = vpop.f32.mrb[3].mxu0 }
 0x197   :  { %v733_v61 = vadd.f32 %v732_v62, %v583_v49  ;;  %v818_v0 = vadd.f32 %v1632_v51, %v729_v55 }
 0x198   :  { %v819_v52 = vadd.f32 %v1629_v48, %v731_v60  ;;  %v849_v4 = vmax.f32 %v817_v58, 0.0 }
 0x199   :  { %v820_v1 = vadd.f32 %v1632_v51, %v733_v61  ;;  %v850_v10 = vmax.f32 %v818_v0, 0.0  ;;  %v522_v61 = vpop.permute.xlu1 %521  ;;  %v527_v0 = vpop.permute.xlu0 %526 }
 0x19a   :  { %v851_v5 = vmax.f32 %v819_v52, 0.0  ;;  %v592_v52 = vmul.f32 %v1618_v43, %v522_v61 }
 0x19b   :  { %v852_v11 = vmax.f32 %v820_v1, 0.0  ;;  %v593_v1 = vmul.f32 %v1620_v44, %v522_v61 }
 0x19c   :  { %v881_v12 = vpack.c.bf16 %v851_v5, %v849_v4  ;;  %v594_v4 = vmul.f32 %v1618_v43, %v527_v0 }
 0x19d   :  { %v882_v13 = vpack.c.bf16 %v852_v11, %v850_v10  ;;  %v595_v10 = vmul.f32 %v1620_v44, %v527_v0 }
 0x19f   :  { %933 = vmatprep.subr.bf16.mxu1 %v882_v13 }
 0x1a0   :  { %934 = vmatpush1.bf16.xpose.msra.mxu1 %v881_v12 }
 0x1a9   :  { %v736_v22 = vpop.f32.mrb[4].mxu0 }
 0x1aa   :  { %v737_v23 = vadd.f32 %v736_v22, %v584_v17  ;;  %v738_v16 = vpop.f32.mrb[5].mxu0 }
 0x1ab   :  { %v739_v24 = vadd.f32 %v738_v16, %v585_v19  ;;  %v740_v25 = vpop.f32.mrb[6].mxu0 }
 0x1ac   :  { %v821_v26 = vadd.f32 %v1629_v48, %v737_v23  ;;  %v741_v63 = vadd.f32 %v740_v25, %v586_v20  ;;  %v742_v27 = vpop.f32.mrb[7].mxu0 }
 0x1ad   :  { %v822_v29 = vadd.f32 %v1632_v51, %v739_v24  ;;  %v743_v30 = vadd.f32 %v742_v27, %v587_v21 }
 0x1ae   :  { %v823_v18 = vadd.f32 %v1629_v48, %v741_v63  ;;  %v853_v34 = vmax.f32 %v821_v26, 0.0  ;;  %v1117_v63 = vmov 1966171168  }
 0x1af   :  { %v824_v32 = vadd.f32 %v1632_v51, %v743_v30  ;;  %v854_v39 = vmax.f32 %v822_v29, 0.0  ;;  %v918_v27 = vunpack.c.l.s4 %v1117_v63  ;;  %v1665_v29 = vld.sshfl [vmem:[%s1728_s5] sm:$0x11 pattern:$0x75316420]  ;;  %s1118_s5 = smov [#allocation3]  }
 0x1b0   :  { %v855_v35 = vmax.f32 %v823_v18, 0.0  ;;  %v916_v18 = vcombine.high %v1665_v29, %v1665_v29  ;;  %s980_s25 = sshll.u32 %s1118_s5, 4  ;;  %s981_s25 = int_to_ptr.vmem [resolvable:$true] %s980_s25 }
 0x1b1   :  { %v856_v2 = vmax.f32 %v824_v32, 0.0  ;;  %v919_v31 = vunpack.c.0.s8 %v918_v27  ;;  %s1087_s26 = scalar_lea.vmem %s981_s25, 16  ;;  %s1091_s27 = scalar_lea.vmem %s981_s25, 32 }
 0x1b2   :  { %v746_v6 = vpop.f32.mrb[8].mxu0  ;;  %v883_v37 = vpack.c.bf16 %v855_v35, %v853_v34  ;;  %v532_v35 = vpop.permute.xlu1 %531  ;;  %p1088_p0 = scmp.ne.s32.totalorder %s981_s25, %s1087_s26  ;;  %p1092_p1 = scmp.lt.s32.totalorder %s981_s25, %s981_s25 }
 0x1b3   :  { %v747_v40 = vadd.f32 %v746_v6, %v588_v33  ;;  %v748_v41 = vpop.f32.mrb[9].mxu0  ;;  %v884_v42 = vpack.c.bf16 %v856_v2, %v854_v39  ;;  %v1670_v32 = vsub.s32 %v919_v31, %v1608_v9  ;;  %v596_v39 = vmul.f32 %v1618_v43, %v532_v35  ;;  %p1093_p2 = scmp.lt.s32.totalorder %s1091_s27, %s1087_s26 }
 0x1b4   :  { %v749_v59 = vadd.f32 %v748_v41, %v589_v38  ;;  %v750_v7 = vpop.f32.mrb[10].mxu0  ;;  %v537_v38 = vpop.permute.xlu0 %536  ;;  %v597_v2 = vmul.f32 %v1620_v44, %v532_v35 }
 0x1b5   :  { %v825_v56 = vadd.f32 %v1629_v48, %v747_v40  ;;  %v751_v45 = vadd.f32 %v750_v7, %v590_v3  ;;  %v752_v46 = vpop.f32.mrb[11].mxu0  ;;  %935 = vmatprep.subr.bf16.mxu1 %v884_v42  ;;  %v930_v33 = vrot.slane %v916_v18, %v1670_v32  ;;  %v923_v34 = vrot.slane %v1665_v29, %v1670_v32  ;;  %p1094_p3 = por %p1093_p2, %p1092_p1 }
 0x1b6   :  { %v826_v47 = vadd.f32 %v1632_v51, %v749_v59  ;;  %v753_v49 = vadd.f32 %v752_v46, %v591_v8  ;;  %936 = vmatpush1.bf16.xpose.msra.mxu1 %v883_v37  ;;  %v598_v3 = vmul.f32 %v1618_v43, %v537_v38  ;;  %v599_v8 = vmul.f32 %v1620_v44, %v537_v38 }
 0x1b7   :  { %v827_v50 = vadd.f32 %v1629_v48, %v751_v45  ;;  %v857_v54 = vmax.f32 %v825_v56, 0.0  ;;  %965 = vmatprep.mubr.bf16.mxu1 %v930_v33  ;;  %p1095_p4 = pnand %p1094_p3, %p1088_p0 }
 0x1b8   :  { %v828_v53 = vadd.f32 %v1632_v51, %v753_v49  ;;  %v858_v57 = vmax.f32 %v826_v47, 0.0 }
 0x1b9   :  { %v859_v55 = vmax.f32 %v827_v50, 0.0 }
 0x1ba   :  { %v860_v58 = vmax.f32 %v828_v53, 0.0 }
 0x1bb   :  { %v885_v60 = vpack.c.bf16 %v859_v55, %v857_v54 }
 0x1bc   :  { %v886_v62 = vpack.c.bf16 %v860_v58, %v858_v57  ;;  %v542_v58 = vpop.permute.xlu1 %541 }
 0x1bd   :  { %v601_v61 = vmul.f32 %v1620_v44, %v542_v58 }
 0x1be   :  { %937 = vmatprep.subr.bf16.mxu1 %v886_v62  ;;  %v600_v62 = vmul.f32 %v1618_v43, %v542_v58 }
 0x1bf   :  { %938 = vmatpush1.bf16.xpose.msra.mxu1 %v885_v60  ;;  %v547_v60 = vpop.permute.xlu0 %546 }
 0x1c0   :  { %v602_v0 = vmul.f32 %v1618_v43, %v547_v60 }
 0x1d3   :  { %v756_v5 = vpop.f32.mrb[12].mxu0 }
 0x1d4   :  { %v757_v11 = vadd.f32 %v756_v5, %v592_v52  ;;  %v758_v12 = vpop.f32.mrb[13].mxu0 }
 0x1d5   :  { %v759_v13 = vadd.f32 %v758_v12, %v593_v1  ;;  %v760_v14 = vpop.f32.mrb[14].mxu0  ;;  %v603_v1 = vmul.f32 %v1620_v44, %v547_v60 }
 0x1d6   :  { %v829_v15 = vadd.f32 %v1629_v48, %v757_v11  ;;  %v761_v17 = vadd.f32 %v760_v14, %v594_v4  ;;  %v762_v19 = vpop.f32.mrb[15].mxu0 }
 0x1d7   :  { %v830_v20 = vadd.f32 %v1632_v51, %v759_v13  ;;  %v763_v21 = vadd.f32 %v762_v19, %v595_v10 }
 0x1d8   :  { %v831_v22 = vadd.f32 %v1629_v48, %v761_v17  ;;  %v861_v16 = vmax.f32 %v829_v15, 0.0 }
 0x1d9   :  { %v832_v23 = vadd.f32 %v1632_v51, %v763_v21  ;;  %v862_v25 = vmax.f32 %v830_v20, 0.0 }
 0x1da   :  { %v863_v24 = vmax.f32 %v831_v22, 0.0 }
 0x1db   :  { %v864_v26 = vmax.f32 %v832_v23, 0.0 }
 0x1dc   :  { %v887_v28 = vpack.c.bf16 %v863_v24, %v861_v16 }
 0x1dd   :  { %v888_v30 = vpack.c.bf16 %v864_v26, %v862_v25  ;;  %v552_v26 = vpop.permute.xlu1 %551 }
 0x1de   :  { %v604_v63 = vmul.f32 %v1618_v43, %v552_v26  ;;  %v605_v27 = vmul.f32 %v1620_v44, %v552_v26 }
 0x1df   :  { %939 = vmatprep.subr.bf16.mxu1 %v888_v30 }
 0x1e0   :  { %940 = vmatpush1.bf16.xpose.msra.mxu1 %v887_v28  ;;  %v557_v28 = vpop.permute.xlu0 %556 }
 0x1e1   :  { %v606_v18 = vmul.f32 %v1618_v43, %v557_v28  ;;  %v607_v35 = vmul.f32 %v1620_v44, %v557_v28 }
 0x1f0   :  { %v766_v6 = vpop.f32.mrb[16].mxu0 }
 0x1f1   :  { %v767_v9 = vadd.f32 %v766_v6, %v596_v39  ;;  %v768_v37 = vpop.f32.mrb[17].mxu0 }
 0x1f2   :  { %v769_v40 = vadd.f32 %v768_v37, %v597_v2  ;;  %v770_v41 = vpop.f32.mrb[18].mxu0 }
 0x1f3   :  { %v833_v42 = vadd.f32 %v1629_v48, %v767_v9  ;;  %v771_v59 = vadd.f32 %v770_v41, %v598_v3  ;;  %v772_v7 = vpop.f32.mrb[19].mxu0 }
 0x1f4   :  { %v834_v56 = vadd.f32 %v1632_v51, %v769_v40  ;;  %v773_v45 = vadd.f32 %v772_v7, %v599_v8 }
 0x1f5   :  { %v835_v46 = vadd.f32 %v1629_v48, %v771_v59  ;;  %v865_v49 = vmax.f32 %v833_v42, 0.0 }
 0x1f6   :  { %v836_v47 = vadd.f32 %v1632_v51, %v773_v45  ;;  %v866_v53 = vmax.f32 %v834_v56, 0.0 }
 0x1f7   :  { %v867_v50 = vmax.f32 %v835_v46, 0.0  ;;  %v562_v46 = vpop.permute.xlu1 %561 }
 0x1f8   :  { %v868_v54 = vmax.f32 %v836_v47, 0.0  ;;  %v567_v47 = vpop.permute.xlu0 %566 }
 0x1f9   :  { %v889_v55 = vpack.c.bf16 %v867_v50, %v865_v49  ;;  %v608_v49 = vmul.f32 %v1618_v43, %v562_v46  ;;  %v609_v50 = vmul.f32 %v1620_v44, %v562_v46  ;;  %v611_v58 = vmul.f32 %v1620_v44, %v567_v47 }
 0x1fa   :  { %v890_v57 = vpack.c.bf16 %v868_v54, %v866_v53  ;;  %v610_v54 = vmul.f32 %v1618_v43, %v567_v47 }
 0x1fb   :  { %v902_v44 = vpop.permute.xlu1 %901 }
 0x1fc   :  { %941 = vmatprep.subr.bf16.mxu1 %v890_v57 }
 0x1fd   :  { %942 = vmatpush1.bf16.xpose.msra.mxu1 %v889_v55 }
 0x211   :  { %v776_v52 = vpop.f32.mrb[20].mxu0 }
 0x212   :  { %v777_v4 = vadd.f32 %v776_v52, %v600_v62  ;;  %v778_v5 = vpop.f32.mrb[21].mxu0 }
 0x213   :  { %v779_v10 = vadd.f32 %v778_v5, %v601_v61  ;;  %v780_v11 = vpop.f32.mrb[22].mxu0 }
 0x214   :  { %v837_v12 = vadd.f32 %v1629_v48, %v777_v4  ;;  %v781_v13 = vadd.f32 %v780_v11, %v602_v0  ;;  %v782_v14 = vpop.f32.mrb[23].mxu0 }
 0x215   :  { %v838_v15 = vadd.f32 %v1632_v51, %v779_v10  ;;  %v783_v17 = vadd.f32 %v782_v14, %v603_v1 }
 0x216   :  { %v839_v19 = vadd.f32 %v1629_v48, %v781_v13  ;;  %v869_v21 = vmax.f32 %v837_v12, 0.0 }
 0x217   :  { %v840_v20 = vadd.f32 %v1632_v51, %v783_v17  ;;  %v870_v23 = vmax.f32 %v838_v15, 0.0  ;;  %v907_v17 = vrot.slane %v902_v44, %v1611_v36 }
 0x218   :  { %v871_v22 = vmax.f32 %v839_v19, 0.0 }
 0x219   :  { %v872_v16 = vmax.f32 %v840_v20, 0.0 }
 0x21a   :  { %v891_v24 = vpack.c.bf16 %v871_v22, %v869_v21 }
 0x21b   :  { %v892_v25 = vpack.c.bf16 %v872_v16, %v870_v23 }
 0x21d   :  { %943 = vmatprep.subr.bf16.mxu1 %v892_v25 }
 0x21e   :  { %944 = vmatpush1.bf16.xpose.msra.mxu1 %v891_v24 }
 0x232   :  { %v786_v30 = vpop.f32.mrb[24].mxu0 }
 0x233   :  { %v787_v31 = vadd.f32 %v786_v30, %v604_v63  ;;  %v788_v33 = vpop.f32.mrb[25].mxu0 }
 0x234   :  { %v789_v38 = vadd.f32 %v788_v33, %v605_v27  ;;  %v790_v39 = vpop.f32.mrb[26].mxu0 }
 0x235   :  { %v841_v2 = vadd.f32 %v1629_v48, %v787_v31  ;;  %v791_v3 = vadd.f32 %v790_v39, %v606_v18  ;;  %v792_v6 = vpop.f32.mrb[27].mxu0 }
 0x236   :  { %v842_v8 = vadd.f32 %v1632_v51, %v789_v38  ;;  %v793_v9 = vadd.f32 %v792_v6, %v607_v35 }
 0x237   :  { %v843_v37 = vadd.f32 %v1629_v48, %v791_v3  ;;  %v873_v41 = vmax.f32 %v841_v2, 0.0 }
 0x238   :  { %v844_v40 = vadd.f32 %v1632_v51, %v793_v9  ;;  %v874_v59 = vmax.f32 %v842_v8, 0.0 }
 0x239   :  { %v875_v42 = vmax.f32 %v843_v37, 0.0 }
 0x23a   :  { %v876_v7 = vmax.f32 %v844_v40, 0.0 }
 0x23b   :  { %v893_v56 = vpack.c.bf16 %v875_v42, %v873_v41 }
 0x23c   :  { %v894_v45 = vpack.c.bf16 %v876_v7, %v874_v59 }
 0x23e   :  { %945 = vmatprep.subr.bf16.mxu1 %v894_v45 }
 0x23f   :  { %946 = vmatpush1.bf16.xpose.msra.mxu1 %v893_v56 }
 0x24f   :  { %v796_v53 = vpop.f32.mrb[28].mxu0 }
 0x250   :  { %v797_v55 = vadd.f32 %v796_v53, %v608_v49  ;;  %v798_v57 = vpop.f32.mrb[29].mxu0 }
 0x251   :  { %v799_v60 = vadd.f32 %v798_v57, %v609_v50  ;;  %v800_v62 = vpop.f32.mrb[30].mxu0 }
 0x252   :  { %v845_v61 = vadd.f32 %v1629_v48, %v797_v55  ;;  %v801_v0 = vadd.f32 %v800_v62, %v610_v54  ;;  %v802_v52 = vpop.f32.mrb[31].mxu0 }
 0x253   :  { %v846_v1 = vadd.f32 %v1632_v51, %v799_v60  ;;  %v803_v4 = vadd.f32 %v802_v52, %v611_v58 }
 0x254   :  { %v847_v5 = vadd.f32 %v1629_v48, %v801_v0  ;;  %v877_v11 = vmax.f32 %v845_v61, 0.0 }
 0x255   :  { %v848_v10 = vadd.f32 %v1632_v51, %v803_v4  ;;  %v878_v43 = vmax.f32 %v846_v1, 0.0 }
 0x256   :  { %v879_v12 = vmax.f32 %v847_v5, 0.0 }
 0x257   :  { %v880_v13 = vmax.f32 %v848_v10, 0.0 }
 0x258   :  { %v895_v14 = vpack.c.bf16 %v879_v12, %v877_v11 }
 0x259   :  { %v896_v15 = vpack.c.bf16 %v880_v13, %v878_v43 }
 0x25b   :  { %947 = vmatprep.subr.bf16.mxu1 %v896_v15 }
 0x25c   :  { %948 = vmatpush1.bf16.xpose.msra.mxu1 %v895_v14 }
 0x263   :  { %966 = vmatmul.mubr.bf16.vlgmr.msra.gmra.mrb[0].mxu1 %v923_v34 }
 0x336   :  { %v967_v48 = vpop.f32.mrb[0].mxu1 }
 0x337   :  { %v968_v19 = vadd.f32 %v967_v48, %v907_v17  ;;  %v969_v51 = vpop.f32.mrb[1].mxu1 }
 0x338   :  { %v970_v20 = vpop.f32.mrb[2].mxu1 }
 0x339   :  { %973 = vst [vmem:[#allocation3] sm:$0x1] %v968_v19  ;;  %v971_v21 = vpop.f32.mrb[3].mxu1 }
 0x33a   :  { %1098 = shalt.err (!%p1095_p4)
}
 0x33b   :  { %s1099_s6 = scalar_lea.hbm %s1730_s7, 16 }
 0x33c   :  { %p1100_p5 = scmp.ne.s32.totalorder %s1730_s7, %s1099_s6  ;;  %p1103_p6 = scmp.lt.u32.totalorder %s1099_s6, %s1730_s7 }
 0x33e   :  { %p1105_p7 = pnand %p1103_p6, %p1100_p5 }
 0x340   :  { %1108 = shalt.err (!%p1105_p7)
}
 0x341   :  { %983 = dma.vmem_to_hbm [thread:$0]  %s981_s25, 16, %s1730_s7, [#allocation4]  }
 0x342   :  { %1109 = dma.done.wait [#allocation4], 16  }
 0x343   :  { %1110 = vsyncadd [#allocation4], 4294967280 }
 0x344   :  { %987 = vsyncpa [#allocation4], 1 }

</bundles_post_ra>
